<compile_context>
chip_gen: v7x
topology: tpu7x:2x2x1
jax: 0.10.0
libtpu: 0.0.40
codegen_flags: <defaults>
</compile_context>

<pallas_src>
import functools

import jax
import jax.numpy as jnp
import numpy as np
from jax import lax
from jax.experimental import pallas as pl
from jax.experimental.pallas import tpu as pltpu

EPS = 1e-5

# ----------------------------------------------------------------------------
# Parameter construction (deterministic, synthetic)
# ----------------------------------------------------------------------------
def _init_linear(key, in_f, out_f):
    kw, kb = jax.random.split(key)
    bound = 1.0 / np.sqrt(in_f)
    # PyTorch Linear: y = x @ W.T + b, W is (out, in). Store W transposed (in, out).
    w = jax.random.uniform(kw, (out_f, in_f), jnp.float32, -bound, bound).T
    b = jax.random.uniform(kb, (1, out_f), jnp.float32, -bound, bound)
    return w, b


def _init_bn(key, c):
    kg, kb, km, kv = jax.random.split(key, 4)
    gamma = 1.0 + 0.1 * jax.random.normal(kg, (1, c), jnp.float32)
    beta = 0.1 * jax.random.normal(kb, (1, c), jnp.float32)
    mean = 0.1 * jax.random.normal(km, (1, c), jnp.float32)
    var = 1.0 + 0.1 * jax.random.uniform(kv, (1, c), jnp.float32)
    scale = gamma / jnp.sqrt(var + EPS)
    shift = beta - mean * scale
    return scale, shift


def make_params(seed=0):
    key = jax.random.PRNGKey(seed)
    keys = jax.random.split(key, 32)
    p = {}
    p["bn1"] = _init_bn(keys[0], 14)
    p["fc1_1"] = _init_linear(keys[1], 14, 16)
    p["bn2"] = _init_bn(keys[2], 16)
    p["fc1_2"] = _init_linear(keys[3], 16, 16)
    p["bn3"] = _init_bn(keys[4], 16)
    p["fc1_3"] = _init_linear(keys[5], 16, 8)
    p["bn4"] = _init_bn(keys[6], 220)
    p["fc2_1"] = _init_linear(keys[7], 220, 32)
    p["bn5"] = _init_bn(keys[8], 32)
    p["fc2_2"] = _init_linear(keys[9], 32, 16)
    p["bn6"] = _init_bn(keys[10], 16)
    p["fc2_3"] = _init_linear(keys[11], 16, 16)
    p["bn7"] = _init_bn(keys[12], 24)
    p["fc3_1"] = _init_linear(keys[13], 24, 32)
    p["bn8"] = _init_bn(keys[14], 32)
    p["fc3_2"] = _init_linear(keys[15], 32, 16)
    p["bn9"] = _init_bn(keys[16], 16)
    p["fc3_3"] = _init_linear(keys[17], 16, 8)
    p["fc4_1"] = _init_linear(keys[18], 8, 4)
    p["fc4_2"] = _init_linear(keys[19], 8, 3)
    p["fc4_3"] = _init_linear(keys[20], 8, 1)
    return p


# ----------------------------------------------------------------------------
# Packed-parameter layout (BN folded into the following Linear at pack time)
# ----------------------------------------------------------------------------
# w_small slab (9, 32, 32): each folded weight zero-padded to 32x32
IW_FC1_2, IW_FC1_3 = 0, 1
IW_FC2_2, IW_FC2_3 = 2, 3
IW_FC3_1A, IW_FC3_1B = 4, 5          # fc3_1 rows [:8] (x1 part), [8:24] (x2 part)
IW_FC3_2, IW_FC3_3 = 6, 7
IW_FC4 = 8                           # fc4_1 | fc4_2 | fc4_3 fused -> (8, 8)
N_WSMALL = 9

# vecs slab (16, 32): folded biases, each zero-padded to 32 lanes
IV_B11, IV_B12, IV_B13 = 0, 1, 2
IV_B21, IV_B22, IV_B23 = 3, 4, 5
IV_B31, IV_B32, IV_B33 = 6, 7, 8
IV_B4 = 9
N_VEC = 16


def pack_params(p):
    """Fold every BN into the following Linear and pack into 4 buffers."""

    def fold(bn_key, fc_key):
        scale = np.asarray(p[bn_key][0], np.float32).reshape(-1)
        shift = np.asarray(p[bn_key][1], np.float32).reshape(-1)
        w = np.asarray(p[fc_key][0], np.float32)          # (in, out)
        b = np.asarray(p[fc_key][1], np.float32).reshape(-1)
        return scale[:, None] * w, shift @ w + b          # exact affine fold

    w11, b11 = fold("bn1", "fc1_1")   # (14, 16)
    w12, b12 = fold("bn2", "fc1_2")   # (16, 16)
    w13, b13 = fold("bn3", "fc1_3")   # (16, 8)
    w21, b21 = fold("bn4", "fc2_1")   # (220, 32)
    w22, b22 = fold("bn5", "fc2_2")   # (32, 16)
    w23, b23 = fold("bn6", "fc2_3")   # (16, 16)
    w31, b31 = fold("bn7", "fc3_1")   # (24, 32)
    w32, b32 = fold("bn8", "fc3_2")   # (32, 16)
    w33, b33 = fold("bn9", "fc3_3")   # (16, 8)

    w4 = np.concatenate([np.asarray(p["fc4_1"][0], np.float32),
                         np.asarray(p["fc4_2"][0], np.float32),
                         np.asarray(p["fc4_3"][0], np.float32)], axis=1)   # (8, 8)
    b4 = np.concatenate([np.asarray(p["fc4_1"][1], np.float32).reshape(-1),
                         np.asarray(p["fc4_2"][1], np.float32).reshape(-1),
                         np.asarray(p["fc4_3"][1], np.float32).reshape(-1)])  # (8,)

    # fc1_1 (bn1 folded): standalone (14, 32) so x1 stays unpadded; output
    # columns 16:32 are zero so downstream padded lanes stay exactly 0.
    w11_p = np.zeros((14, 32), np.float32)
    w11_p[:, :16] = w11

    # fc2_1 (bn4 folded): exact (220, 32), matches the unpadded x2 lanes.
    w_big = np.ascontiguousarray(w21)

    w_entries = {
        IW_FC1_2: w12, IW_FC1_3: w13,
        IW_FC2_2: w22, IW_FC2_3: w23,
        IW_FC3_1A: w31[:8, :], IW_FC3_1B: w31[8:, :],
        IW_FC3_2: w32, IW_FC3_3: w33,
        IW_FC4: w4,
    }
    w_small = np.zeros((N_WSMALL, 32, 32), np.float32)
    for idx, w in w_entries.items():
        w_small[idx, : w.shape[0], : w.shape[1]] = w

    v_entries = {
        IV_B11: b11, IV_B12: b12, IV_B13: b13,
        IV_B21: b21, IV_B22: b22, IV_B23: b23,
        IV_B31: b31, IV_B32: b32, IV_B33: b33,
        IV_B4: b4,
    }
    vecs = np.zeros((N_VEC, 32), np.float32)
    for idx, row in v_entries.items():
        vecs[idx, : row.shape[0]] = row

    return (jnp.asarray(w11_p), jnp.asarray(w_big),
            jnp.asarray(w_small), jnp.asarray(vecs))


# ----------------------------------------------------------------------------
# Pallas kernel: entire forward pass for one batch tile
# ----------------------------------------------------------------------------
def _dnn_kernel(x1_ref, x2_ref, w11_ref, wbig_ref, ws_ref, vec_ref, out_ref):
    vec = vec_ref[...]                      # (16, 32)

    def b(k):                               # (1, 32) broadcastable bias row
        return vec[k:k + 1, :]

    relu = lambda t: jnp.maximum(t, 0.0)

    def lin(x, wk, bk):                     # (tile, 32) @ (32, 32) + bias
        return jnp.dot(x, ws_ref[wk], preferred_element_type=jnp.float32) + b(bk)

    # Branch 1: x1 (tile, 14), BN already folded into each weight.
    h1 = relu(jnp.dot(x1_ref[...], w11_ref[...],
                      preferred_element_type=jnp.float32) + b(IV_B11))
    h1 = relu(lin(h1, IW_FC1_2, IV_B12))
    h1 = relu(lin(h1, IW_FC1_3, IV_B13))    # valid lanes 0:8

    # Branch 2: x2 (tile, 220) feeds the big matmul directly (bn4 folded).
    h2 = relu(jnp.dot(x2_ref[...], wbig_ref[...],
                      preferred_element_type=jnp.float32) + b(IV_B21))
    h2 = relu(lin(h2, IW_FC2_2, IV_B22))
    h2 = relu(lin(h2, IW_FC2_3, IV_B23))    # valid lanes 0:16

    # cat((x1, x2)) + bn7 + fc3_1 without a lane concat: bn7 is folded and the
    # fc3_1 weight is pre-split into the x1 (8-row) and x2 (16-row) pieces.
    x = relu(jnp.dot(h1, ws_ref[IW_FC3_1A], preferred_element_type=jnp.float32)
             + jnp.dot(h2, ws_ref[IW_FC3_1B], preferred_element_type=jnp.float32)
             + b(IV_B31))
    x = relu(lin(x, IW_FC3_2, IV_B32))
    x = relu(lin(x, IW_FC3_3, IV_B33))      # valid lanes 0:8

    # Fused output heads: one matmul, one sigmoid pass (tanh = 2*sigmoid(2z)-1).
    z = jnp.dot(x, ws_ref[IW_FC4], preferred_element_type=jnp.float32) + b(IV_B4)
    lane = lax.broadcasted_iota(jnp.int32, z.shape, 1)
    is_tanh = (lane >= 4) & (lane < 7)
    s = jax.nn.sigmoid(jnp.where(is_tanh, 2.0 * z, z))
    y = jnp.where(is_tanh, 2.0 * s - 1.0, s)
    out_ref[...] = y[:, 0:8]


# ----------------------------------------------------------------------------
# Wrapper
# ----------------------------------------------------------------------------
def _round_up(x, m):
    return -(-x // m) * m


@functools.partial(jax.jit, static_argnames=("max_batch_tile",))
def dnn_forward(x1, x2, packed, max_batch_tile=2048):
    w11, w_big, w_small, vecs = packed
    B = x1.shape[0]
    d1 = x1.shape[1]     # 14
    d2 = x2.shape[1]     # 220

    # Batch tile: multiple of 8, capped at max_batch_tile, and chosen so the
    # grid has >= 2 steps whenever B allows it (keeps both TensorCores busy on
    # dual-core chips).  Last block may be ragged; Pallas masks its writes.
    tile = min(max_batch_tile, max(_round_up(-(-B // 2), 8), 8))
    grid = (pl.cdiv(B, tile),)

    x1 = x1.astype(jnp.float32)
    x2 = x2.astype(jnp.float32)

    return pl.pallas_call(
        _dnn_kernel,
        out_shape=jax.ShapeDtypeStruct((B, 8), jnp.float32),
        grid=grid,
        in_specs=[
            pl.BlockSpec((tile, d1), lambda i: (i, 0)),          # x1, unpadded
            pl.BlockSpec((tile, d2), lambda i: (i, 0)),          # x2, unpadded
            pl.BlockSpec(w11.shape, lambda i: (0, 0)),
            pl.BlockSpec(w_big.shape, lambda i: (0, 0)),
            pl.BlockSpec(w_small.shape, lambda i: (0, 0, 0)),
            pl.BlockSpec(vecs.shape, lambda i: (0, 0)),
        ],
        out_specs=pl.BlockSpec((tile, 8), lambda i: (i, 0)),
        compiler_params=pltpu.CompilerParams(
            dimension_semantics=("parallel",),
            vmem_limit_bytes=32 * 1024 * 1024),
    )(x1, x2, w11, w_big, w_small, vecs)


# ----------------------------------------------------------------------------
# Pure-JAX reference (unpacked, unfolded params) for sanity checking
# ----------------------------------------------------------------------------
def dnn_reference(x1, x2, p):
    def bn(x, sb): return x * sb[0] + sb[1]
    def lin(x, wb): return x @ wb[0] + wb[1]
    relu = lambda v: jnp.maximum(v, 0.0)
    x1 = relu(lin(bn(x1, p["bn1"]), p["fc1_1"]))
    x1 = relu(lin(bn(x1, p["bn2"]), p["fc1_2"]))
    x1 = relu(lin(bn(x1, p["bn3"]), p["fc1_3"]))
    x2 = relu(lin(bn(x2, p["bn4"]), p["fc2_1"]))
    x2 = relu(lin(bn(x2, p["bn5"]), p["fc2_2"]))
    x2 = relu(lin(bn(x2, p["bn6"]), p["fc2_3"]))
    x = jnp.concatenate([x1, x2], axis=1)
    x = relu(lin(bn(x, p["bn7"]), p["fc3_1"]))
    x = relu(lin(bn(x, p["bn8"]), p["fc3_2"]))
    x = relu(lin(bn(x, p["bn9"]), p["fc3_3"]))
    y1 = jax.nn.sigmoid(lin(x, p["fc4_1"]))
    y2 = jnp.tanh(lin(x, p["fc4_2"]))
    y3 = jax.nn.sigmoid(lin(x, p["fc4_3"]))
    return jnp.concatenate([y1, y2, y3], axis=1)


if __name__ == "__main__":
    key = jax.random.PRNGKey(0)
    k1, k2, k3, k4 = jax.random.split(key, 4)

    params = make_params(seed=0)
    packed = pack_params(params)

    # Small batch: 2 grid steps of 8 rows, exact tiling.
    B = 16
    x1 = jax.random.normal(k1, (B, 14), jnp.float32)
    x2 = jax.random.normal(k2, (B, 220), jnp.float32)
    out = jax.block_until_ready(dnn_forward(x1, x2, packed))
    with jax.default_matmul_precision("highest"):
        ref = dnn_reference(x1, x2, params)
    np.testing.assert_allclose(np.asarray(out), np.asarray(ref),
                               rtol=1e-4, atol=1e-4)

    # Larger batch: exercises the ragged last grid block (1000 rows, tile 504).
    B2 = 1000
    x1b = jax.random.normal(k3, (B2, 14), jnp.float32)
    x2b = jax.random.normal(k4, (B2, 220), jnp.float32)
    outb = jax.block_until_ready(dnn_forward(x1b, x2b, packed))
    with jax.default_matmul_precision("highest"):
        refb = dnn_reference(x1b, x2b, params)
    np.testing.assert_allclose(np.asarray(outb), np.asarray(refb),
                               rtol=1e-4, atol=1e-4)

    print("KERNEL_OK")
</pallas_src>

<mosaic_0001>
module attributes {stable_mosaic.version = 11 : i64} {
  func.func @_dnn_kernel(%arg0: i32, %arg1: memref<8x14xf32, #tpu.memory_space<vmem>>, %arg2: memref<8x220xf32, #tpu.memory_space<vmem>>, %arg3: memref<14x32xf32, #tpu.memory_space<vmem>>, %arg4: memref<220x32xf32, #tpu.memory_space<vmem>>, %arg5: memref<9x32x32xf32, #tpu.memory_space<vmem>>, %arg6: memref<16x32xf32, #tpu.memory_space<vmem>>, %arg7: memref<8x8xf32, #tpu.memory_space<vmem>>) attributes {dimension_semantics = [#tpu.dimension_semantics<parallel>], iteration_bounds = array<i64: 2>, scalar_prefetch = 0 : i64, scratch_operands = 0 : i64, tpu.core_type = #tpu.core_type<tc>, window_params = [{transform_indices = @transform_0, window_bounds = array<i64: 8, 14>}, {transform_indices = @transform_1, window_bounds = array<i64: 8, 220>}, {pipeline_mode = #tpu.pipeline_mode<synchronous>, transform_indices = @transform_2, window_bounds = array<i64: 14, 32>}, {pipeline_mode = #tpu.pipeline_mode<synchronous>, transform_indices = @transform_3, window_bounds = array<i64: 220, 32>}, {pipeline_mode = #tpu.pipeline_mode<synchronous>, transform_indices = @transform_4, window_bounds = array<i64: 9, 32, 32>}, {pipeline_mode = #tpu.pipeline_mode<synchronous>, transform_indices = @transform_5, window_bounds = array<i64: 16, 32>}, {transform_indices = @transform_6, window_bounds = array<i64: 8, 8>}]} {
    %c0 = arith.constant 0 : index
    %c0_0 = arith.constant 0 : index
    %0 = vector.load %arg6[%c0, %c0_0] : memref<16x32xf32, #tpu.memory_space<vmem>>, vector<16x32xf32>
    %c0_1 = arith.constant 0 : index
    %c0_2 = arith.constant 0 : index
    %1 = vector.load %arg1[%c0_1, %c0_2] : memref<8x14xf32, #tpu.memory_space<vmem>>, vector<8x14xf32>
    %c0_3 = arith.constant 0 : index
    %c0_4 = arith.constant 0 : index
    %2 = vector.load %arg3[%c0_3, %c0_4] : memref<14x32xf32, #tpu.memory_space<vmem>>, vector<14x32xf32>
    %cst = arith.constant dense<0.000000e+00> : vector<8x32xf32>
    %3 = tpu.matmul %1, %2, %cst {dimension_numbers = #tpu.dot_dimension_numbers<[1], [0], [0], [1], [0, 0, 1, 1], [], []>} : vector<8x14xf32>, vector<14x32xf32>, vector<8x32xf32> -> vector<8x32xf32>
    %4 = vector.extract_strided_slice %0 {offsets = [0, 0], sizes = [1, 32], strides = [1, 1]} : vector<16x32xf32> to vector<1x32xf32>
    %5 = vector.broadcast %4 : vector<1x32xf32> to vector<8x32xf32>
    %6 = arith.addf %3, %5 : vector<8x32xf32>
    %cst_5 = arith.constant 0.000000e+00 : f32
    %7 = vector.broadcast %cst_5 : f32 to vector<8x32xf32>
    %8 = arith.maximumf %6, %7 : vector<8x32xf32>
    %c0_6 = arith.constant 0 : index
    %c0_7 = arith.constant 0 : index
    %c0_8 = arith.constant 0 : index
    %9 = vector.load %arg5[%c0_6, %c0_7, %c0_8] : memref<9x32x32xf32, #tpu.memory_space<vmem>>, vector<1x32x32xf32>
    %10 = vector.shape_cast %9 : vector<1x32x32xf32> to vector<32x32xf32>
    %cst_9 = arith.constant dense<0.000000e+00> : vector<8x32xf32>
    %11 = tpu.matmul %8, %10, %cst_9 {dimension_numbers = #tpu.dot_dimension_numbers<[1], [0], [0], [1], [0, 0, 1, 1], [], []>} : vector<8x32xf32>, vector<32x32xf32>, vector<8x32xf32> -> vector<8x32xf32>
    %12 = vector.extract_strided_slice %0 {offsets = [1, 0], sizes = [1, 32], strides = [1, 1]} : vector<16x32xf32> to vector<1x32xf32>
    %13 = vector.broadcast %12 : vector<1x32xf32> to vector<8x32xf32>
    %14 = arith.addf %11, %13 : vector<8x32xf32>
    %cst_10 = arith.constant 0.000000e+00 : f32
    %15 = vector.broadcast %cst_10 : f32 to vector<8x32xf32>
    %16 = arith.maximumf %14, %15 : vector<8x32xf32>
    %c1 = arith.constant 1 : index
    %c0_11 = arith.constant 0 : index
    %c0_12 = arith.constant 0 : index
    %17 = vector.load %arg5[%c1, %c0_11, %c0_12] : memref<9x32x32xf32, #tpu.memory_space<vmem>>, vector<1x32x32xf32>
    %18 = vector.shape_cast %17 : vector<1x32x32xf32> to vector<32x32xf32>
    %cst_13 = arith.constant dense<0.000000e+00> : vector<8x32xf32>
    %19 = tpu.matmul %16, %18, %cst_13 {dimension_numbers = #tpu.dot_dimension_numbers<[1], [0], [0], [1], [0, 0, 1, 1], [], []>} : vector<8x32xf32>, vector<32x32xf32>, vector<8x32xf32> -> vector<8x32xf32>
    %20 = vector.extract_strided_slice %0 {offsets = [2, 0], sizes = [1, 32], strides = [1, 1]} : vector<16x32xf32> to vector<1x32xf32>
    %21 = vector.broadcast %20 : vector<1x32xf32> to vector<8x32xf32>
    %22 = arith.addf %19, %21 : vector<8x32xf32>
    %cst_14 = arith.constant 0.000000e+00 : f32
    %23 = vector.broadcast %cst_14 : f32 to vector<8x32xf32>
    %24 = arith.maximumf %22, %23 : vector<8x32xf32>
    %c0_15 = arith.constant 0 : index
    %c0_16 = arith.constant 0 : index
    %25 = vector.load %arg2[%c0_15, %c0_16] : memref<8x220xf32, #tpu.memory_space<vmem>>, vector<8x220xf32>
    %c0_17 = arith.constant 0 : index
    %c0_18 = arith.constant 0 : index
    %26 = vector.load %arg4[%c0_17, %c0_18] : memref<220x32xf32, #tpu.memory_space<vmem>>, vector<220x32xf32>
    %cst_19 = arith.constant dense<0.000000e+00> : vector<8x32xf32>
    %27 = tpu.matmul %25, %26, %cst_19 {dimension_numbers = #tpu.dot_dimension_numbers<[1], [0], [0], [1], [0, 0, 1, 1], [], []>} : vector<8x220xf32>, vector<220x32xf32>, vector<8x32xf32> -> vector<8x32xf32>
    %28 = vector.extract_strided_slice %0 {offsets = [3, 0], sizes = [1, 32], strides = [1, 1]} : vector<16x32xf32> to vector<1x32xf32>
    %29 = vector.broadcast %28 : vector<1x32xf32> to vector<8x32xf32>
    %30 = arith.addf %27, %29 : vector<8x32xf32>
    %cst_20 = arith.constant 0.000000e+00 : f32
    %31 = vector.broadcast %cst_20 : f32 to vector<8x32xf32>
    %32 = arith.maximumf %30, %31 : vector<8x32xf32>
    %c2 = arith.constant 2 : index
    %c0_21 = arith.constant 0 : index
    %c0_22 = arith.constant 0 : index
    %33 = vector.load %arg5[%c2, %c0_21, %c0_22] : memref<9x32x32xf32, #tpu.memory_space<vmem>>, vector<1x32x32xf32>
    %34 = vector.shape_cast %33 : vector<1x32x32xf32> to vector<32x32xf32>
    %cst_23 = arith.constant dense<0.000000e+00> : vector<8x32xf32>
    %35 = tpu.matmul %32, %34, %cst_23 {dimension_numbers = #tpu.dot_dimension_numbers<[1], [0], [0], [1], [0, 0, 1, 1], [], []>} : vector<8x32xf32>, vector<32x32xf32>, vector<8x32xf32> -> vector<8x32xf32>
    %36 = vector.extract_strided_slice %0 {offsets = [4, 0], sizes = [1, 32], strides = [1, 1]} : vector<16x32xf32> to vector<1x32xf32>
    %37 = vector.broadcast %36 : vector<1x32xf32> to vector<8x32xf32>
    %38 = arith.addf %35, %37 : vector<8x32xf32>
    %cst_24 = arith.constant 0.000000e+00 : f32
    %39 = vector.broadcast %cst_24 : f32 to vector<8x32xf32>
    %40 = arith.maximumf %38, %39 : vector<8x32xf32>
    %c3 = arith.constant 3 : index
    %c0_25 = arith.constant 0 : index
    %c0_26 = arith.constant 0 : index
    %41 = vector.load %arg5[%c3, %c0_25, %c0_26] : memref<9x32x32xf32, #tpu.memory_space<vmem>>, vector<1x32x32xf32>
    %42 = vector.shape_cast %41 : vector<1x32x32xf32> to vector<32x32xf32>
    %cst_27 = arith.constant dense<0.000000e+00> : vector<8x32xf32>
    %43 = tpu.matmul %40, %42, %cst_27 {dimension_numbers = #tpu.dot_dimension_numbers<[1], [0], [0], [1], [0, 0, 1, 1], [], []>} : vector<8x32xf32>, vector<32x32xf32>, vector<8x32xf32> -> vector<8x32xf32>
    %44 = vector.extract_strided_slice %0 {offsets = [5, 0], sizes = [1, 32], strides = [1, 1]} : vector<16x32xf32> to vector<1x32xf32>
    %45 = vector.broadcast %44 : vector<1x32xf32> to vector<8x32xf32>
    %46 = arith.addf %43, %45 : vector<8x32xf32>
    %cst_28 = arith.constant 0.000000e+00 : f32
    %47 = vector.broadcast %cst_28 : f32 to vector<8x32xf32>
    %48 = arith.maximumf %46, %47 : vector<8x32xf32>
    %c4 = arith.constant 4 : index
    %c0_29 = arith.constant 0 : index
    %c0_30 = arith.constant 0 : index
    %49 = vector.load %arg5[%c4, %c0_29, %c0_30] : memref<9x32x32xf32, #tpu.memory_space<vmem>>, vector<1x32x32xf32>
    %50 = vector.shape_cast %49 : vector<1x32x32xf32> to vector<32x32xf32>
    %cst_31 = arith.constant dense<0.000000e+00> : vector<8x32xf32>
    %51 = tpu.matmul %24, %50, %cst_31 {dimension_numbers = #tpu.dot_dimension_numbers<[1], [0], [0], [1], [0, 0, 1, 1], [], []>} : vector<8x32xf32>, vector<32x32xf32>, vector<8x32xf32> -> vector<8x32xf32>
    %c5 = arith.constant 5 : index
    %c0_32 = arith.constant 0 : index
    %c0_33 = arith.constant 0 : index
    %52 = vector.load %arg5[%c5, %c0_32, %c0_33] : memref<9x32x32xf32, #tpu.memory_space<vmem>>, vector<1x32x32xf32>
    %53 = vector.shape_cast %52 : vector<1x32x32xf32> to vector<32x32xf32>
    %cst_34 = arith.constant dense<0.000000e+00> : vector<8x32xf32>
    %54 = tpu.matmul %48, %53, %cst_34 {dimension_numbers = #tpu.dot_dimension_numbers<[1], [0], [0], [1], [0, 0, 1, 1], [], []>} : vector<8x32xf32>, vector<32x32xf32>, vector<8x32xf32> -> vector<8x32xf32>
    %55 = arith.addf %51, %54 : vector<8x32xf32>
    %56 = vector.extract_strided_slice %0 {offsets = [6, 0], sizes = [1, 32], strides = [1, 1]} : vector<16x32xf32> to vector<1x32xf32>
    %57 = vector.broadcast %56 : vector<1x32xf32> to vector<8x32xf32>
    %58 = arith.addf %55, %57 : vector<8x32xf32>
    %cst_35 = arith.constant 0.000000e+00 : f32
    %59 = vector.broadcast %cst_35 : f32 to vector<8x32xf32>
    %60 = arith.maximumf %58, %59 : vector<8x32xf32>
    %c6 = arith.constant 6 : index
    %c0_36 = arith.constant 0 : index
    %c0_37 = arith.constant 0 : index
    %61 = vector.load %arg5[%c6, %c0_36, %c0_37] : memref<9x32x32xf32, #tpu.memory_space<vmem>>, vector<1x32x32xf32>
    %62 = vector.shape_cast %61 : vector<1x32x32xf32> to vector<32x32xf32>
    %cst_38 = arith.constant dense<0.000000e+00> : vector<8x32xf32>
    %63 = tpu.matmul %60, %62, %cst_38 {dimension_numbers = #tpu.dot_dimension_numbers<[1], [0], [0], [1], [0, 0, 1, 1], [], []>} : vector<8x32xf32>, vector<32x32xf32>, vector<8x32xf32> -> vector<8x32xf32>
    %64 = vector.extract_strided_slice %0 {offsets = [7, 0], sizes = [1, 32], strides = [1, 1]} : vector<16x32xf32> to vector<1x32xf32>
    %65 = vector.broadcast %64 : vector<1x32xf32> to vector<8x32xf32>
    %66 = arith.addf %63, %65 : vector<8x32xf32>
    %cst_39 = arith.constant 0.000000e+00 : f32
    %67 = vector.broadcast %cst_39 : f32 to vector<8x32xf32>
    %68 = arith.maximumf %66, %67 : vector<8x32xf32>
    %c7 = arith.constant 7 : index
    %c0_40 = arith.constant 0 : index
    %c0_41 = arith.constant 0 : index
    %69 = vector.load %arg5[%c7, %c0_40, %c0_41] : memref<9x32x32xf32, #tpu.memory_space<vmem>>, vector<1x32x32xf32>
    %70 = vector.shape_cast %69 : vector<1x32x32xf32> to vector<32x32xf32>
    %cst_42 = arith.constant dense<0.000000e+00> : vector<8x32xf32>
    %71 = tpu.matmul %68, %70, %cst_42 {dimension_numbers = #tpu.dot_dimension_numbers<[1], [0], [0], [1], [0, 0, 1, 1], [], []>} : vector<8x32xf32>, vector<32x32xf32>, vector<8x32xf32> -> vector<8x32xf32>
    %72 = vector.extract_strided_slice %0 {offsets = [8, 0], sizes = [1, 32], strides = [1, 1]} : vector<16x32xf32> to vector<1x32xf32>
    %73 = vector.broadcast %72 : vector<1x32xf32> to vector<8x32xf32>
    %74 = arith.addf %71, %73 : vector<8x32xf32>
    %cst_43 = arith.constant 0.000000e+00 : f32
    %75 = vector.broadcast %cst_43 : f32 to vector<8x32xf32>
    %76 = arith.maximumf %74, %75 : vector<8x32xf32>
    %c8 = arith.constant 8 : index
    %c0_44 = arith.constant 0 : index
    %c0_45 = arith.constant 0 : index
    %77 = vector.load %arg5[%c8, %c0_44, %c0_45] : memref<9x32x32xf32, #tpu.memory_space<vmem>>, vector<1x32x32xf32>
    %78 = vector.shape_cast %77 : vector<1x32x32xf32> to vector<32x32xf32>
    %cst_46 = arith.constant dense<0.000000e+00> : vector<8x32xf32>
    %79 = tpu.matmul %76, %78, %cst_46 {dimension_numbers = #tpu.dot_dimension_numbers<[1], [0], [0], [1], [0, 0, 1, 1], [], []>} : vector<8x32xf32>, vector<32x32xf32>, vector<8x32xf32> -> vector<8x32xf32>
    %80 = vector.extract_strided_slice %0 {offsets = [9, 0], sizes = [1, 32], strides = [1, 1]} : vector<16x32xf32> to vector<1x32xf32>
    %81 = vector.broadcast %80 : vector<1x32xf32> to vector<8x32xf32>
    %82 = arith.addf %79, %81 : vector<8x32xf32>
    %83 = tpu.iota {dimensions = array<i32: 1>} : vector<8x32xi32>
    %c4_i32 = arith.constant 4 : i32
    %84 = vector.broadcast %c4_i32 : i32 to vector<8x32xi32>
    %85 = arith.cmpi sge, %83, %84 : vector<8x32xi32>
    %c7_i32 = arith.constant 7 : i32
    %86 = vector.broadcast %c7_i32 : i32 to vector<8x32xi32>
    %87 = arith.cmpi slt, %83, %86 : vector<8x32xi32>
    %88 = arith.andi %85, %87 : vector<8x32xi1>
    %cst_47 = arith.constant 2.000000e+00 : f32
    %89 = vector.broadcast %cst_47 : f32 to vector<8x32xf32>
    %90 = arith.mulf %89, %82 : vector<8x32xf32>
    %91 = arith.select %88, %90, %82 : vector<8x32xi1>, vector<8x32xf32>
    %92 = arith.negf %91 : vector<8x32xf32>
    %93 = math.exp %92 : vector<8x32xf32>
    %cst_48 = arith.constant 1.000000e+00 : f32
    %94 = vector.broadcast %cst_48 : f32 to vector<8x32xf32>
    %95 = arith.addf %94, %93 : vector<8x32xf32>
    %96 = arith.divf %94, %95 : vector<8x32xf32>
    %cst_49 = arith.constant 2.000000e+00 : f32
    %97 = vector.broadcast %cst_49 : f32 to vector<8x32xf32>
    %98 = arith.mulf %97, %96 : vector<8x32xf32>
    %cst_50 = arith.constant 1.000000e+00 : f32
    %99 = vector.broadcast %cst_50 : f32 to vector<8x32xf32>
    %100 = arith.subf %98, %99 : vector<8x32xf32>
    %101 = arith.select %88, %100, %96 : vector<8x32xi1>, vector<8x32xf32>
    %102 = vector.extract_strided_slice %101 {offsets = [0, 0], sizes = [8, 8], strides = [1, 1]} : vector<8x32xf32> to vector<8x8xf32>
    %c0_51 = arith.constant 0 : index
    %c0_52 = arith.constant 0 : index
    %103 = vector.load %arg7[%c0_51, %c0_52] : memref<8x8xf32, #tpu.memory_space<vmem>>, vector<8x8xf32>
    tpu.vector_store %arg7[%c0_51, %c0_52], %102 {strides = array<i32>} : memref<8x8xf32, #tpu.memory_space<vmem>>, vector<8x8xf32>,
    return
  }
  func.func @transform_0(%arg0: i32) -> (i32, i32) {
    %c0_i32 = arith.constant 0 : i32
    %c0_i32_0 = arith.constant 0 : i32
    return %arg0, %c0_i32 : i32, i32
  }
  func.func @transform_1(%arg0: i32) -> (i32, i32) {
    %c0_i32 = arith.constant 0 : i32
    %c0_i32_0 = arith.constant 0 : i32
    return %arg0, %c0_i32 : i32, i32
  }
  func.func @transform_2(%arg0: i32) -> (i32, i32) {
    %c0_i32 = arith.constant 0 : i32
    %c0_i32_0 = arith.constant 0 : i32
    %c0_i32_1 = arith.constant 0 : i32
    return %c0_i32, %c0_i32_0 : i32, i32
  }
  func.func @transform_3(%arg0: i32) -> (i32, i32) {
    %c0_i32 = arith.constant 0 : i32
    %c0_i32_0 = arith.constant 0 : i32
    %c0_i32_1 = arith.constant 0 : i32
    return %c0_i32, %c0_i32_0 : i32, i32
  }
  func.func @transform_4(%arg0: i32) -> (i32, i32, i32) {
    %c0_i32 = arith.constant 0 : i32
    %c0_i32_0 = arith.constant 0 : i32
    %c0_i32_1 = arith.constant 0 : i32
    %c0_i32_2 = arith.constant 0 : i32
    return %c0_i32, %c0_i32_0, %c0_i32_1 : i32, i32, i32
  }
  func.func @transform_5(%arg0: i32) -> (i32, i32) {
    %c0_i32 = arith.constant 0 : i32
    %c0_i32_0 = arith.constant 0 : i32
    %c0_i32_1 = arith.constant 0 : i32
    return %c0_i32, %c0_i32_0 : i32, i32
  }
  func.func @transform_6(%arg0: i32) -> (i32, i32) {
    %c0_i32 = arith.constant 0 : i32
    %c0_i32_0 = arith.constant 0 : i32
    return %arg0, %c0_i32 : i32, i32
  }
}

</mosaic_0001>

<bundles_post_ra>
// kernel: dnn_forward.1
= control target key start
LH: loop header
LB: loop body
LE: loop exit
PB: predicated region body
PF: predicated region fallthrough
CT: control target
= control target key end

     0   :  { %11 = vsyncpa [#allocation3], 0  ;;  %s2420_s0 = inlined_call_operand.hbm [shape: f32[16,14], index: 0, kind: input, shape index: {}]   ;;  %s2421_s1 = inlined_call_operand.hbm [shape: f32[16,220], index: 1, kind: input, shape index: {}]   ;;  %s2422_s2 = inlined_call_operand.hbm [shape: f32[14,32], index: 2, kind: input, shape index: {}]   ;;  %s2423_s3 = inlined_call_operand.vmem [shape: f32[220,32], index: 3, kind: input, shape index: {}]   ;;  %s2424_s4 = inlined_call_operand.vmem [shape: f32[9,32,32], index: 4, kind: input, shape index: {}]   ;;  %s2425_s5 = inlined_call_operand.vmem [shape: f32[16,32], index: 5, kind: input, shape index: {}]   ;;  %s2426_s6 = inlined_call_operand.vmem [shape: f32[16,8], index: 6, kind: output, shape index: {}]  }
   0x1   :  { %13 = vsyncpa [#allocation3 + $0x1], 0 }
   0x2   :  { %14 = vsyncpa [#allocation5], 0 }
   0x3   :  { %16 = vsyncpa [#allocation5 + $0x1], 0  ;;  %s1937_s21 = smov 0   ;;  %s1939_s22 = smov 0  }
   0x4   :  { %s1941_s23 = smov 0   ;;  %s1943_s24 = smov 0  }
   0x5 LB: > { %s1956_s25 = sadd.s32 4294967295, %s1891_s24   ;;  %p42_p0 = scmp.ne.s32.totalorder %s1883_s22, %s1879_s21  ;;  %s1891_s24 = sphi %s1943_s24, %s2443_s24   ;;  %s1887_s23 = sphi %s1941_s23, %s2442_s23   ;;  %s1883_s22 = sphi %s1939_s22, %s2441_s22   ;;  %s1879_s21 = sphi %s1937_s21, %s2440_s21  }
   0x6   : > { %p2427_p1 = scmp.eq.s32.totalorder %s1956_s25, 0  ;;  %p1378_p2 = scmp.ge.s32.totalorder %s1891_s24, 1 }
   0x7   : > { %p189_p3 = scmp.lt.s32.totalorder %s1891_s24, 3  ;;  %s1893_s28 = smov [#allocation6]  }
   0x8   : > { %p1964_p4 = por %p2427_p1, %p42_p0  ;;  %s201_s29 = sshll.u32 %s1893_s28, 4  ;;  %s202_s29 = int_to_ptr.vmem [resolvable:$true] %s201_s29 }
   0x9   : > { %p1968_p5 = pnand %p1378_p2, %p189_p3  ;;  %s1981_s7 = sadd.s32 1, %s1891_s24  }
   0xa   : > { %s2430_s26 = scalar_select %p1964_p4, 1, 0 }
   0xb   : > { %s2431_s27 = scalar_select %p1968_p5, 1, 0 }
   0xc   : > { %p1704_p6 = pneg %p1968_p5  ;;  %s29_s8 = sadd.s32 1, %s1887_s23 }
   0xd   : > { %s26_s9 = ssub.s32 %s1891_s24, %s1981_s7  ;;  %s1761_s12 = scalar_lea.hbm %s2422_s2, 256 }
   0xe   : > { %p1976_p7 = pnand %p1704_p6, %p2427_p1  ;;  %p1762_p8 = scmp.ne.s32.totalorder %s2422_s2, %s1761_s12 }
   0xf   : > { %p1768_p12 = scmp.lt.u32.totalorder %s1761_s12, %s2422_s2 }
  0x10   : > { %p1763_p9 = pneg %p1976_p7 }
  0x12   : > { %p1764_p10 = pnand %p1763_p9, %p1762_p8 }
  0x14   : > { %p1765_p11 = pneg %p1764_p10 }
  0x16   : > { %p1770_p13 = pnand %p1768_p12, %p1765_p11 }
  0x18   : > { %1773 = shalt.err (!%p1770_p13)
}
  0x19   : > { %s1774_s17 = scalar_lea.vmem %s202_s29, 256  ;;  %p1782_p6 = scmp.lt.s32.totalorder %s202_s29, %s202_s29 }
  0x1a   : > { %p1775_p0 = scmp.ne.s32.totalorder %s202_s29, %s1774_s17  ;;  %p1783_p1 = scmp.lt.s32.totalorder %s1774_s17, %s1774_s17 }
  0x1c   : > { %p1777_p2 = pnand %p1775_p0, %p1763_p9  ;;  %p1784_p4 = por %p1783_p1, %p1782_p6 }
  0x1e   : > { %p1778_p3 = pneg %p1777_p2 }
  0x20   : > { %p1785_p5 = pnand %p1784_p4, %p1778_p3 }
  0x22   : > { %1788 = shalt.err (!%p1785_p5)
}
  0x23   : > { %s1894_s18 = smov 128   ;;  %s1895_s19 = smov 8  }
  0x24   : > { %1707 = dma.hbm_to_vmem [thread:$0]  (!%p1976_p7), %s2422_s2, 256, %s202_s29, [#allocation5], %s1894_s18, %s1894_s18, %s1895_s19  }
  0x25   : > { %p27_p8 = scmp.eq.s32.totalorder %s26_s9, 0  ;;  %p36_p1 = scmp.ne.s32.totalorder %s1887_s23, %s1883_s22 }
  0x26   : > { %p37_p4 = scmp.eq.s32.totalorder %s1891_s24, 0  ;;  %p1716_p5 = scmp.lt.s32.totalorder %s1891_s24, 2 }
  0x27   : > { %s2007_s28 = scalar_select %p27_p8, %s1887_s23, %s29_s8  }
  0x28   : > { %p38_p9 = por %p37_p4, %p36_p1  ;;  %s2010_s10 = sand.u32 1, %s1887_s23  }
  0x29   : > { %s1381_s11 = sshll.u32 %s2010_s10, 3  ;;  %s1382_s12 = sshll.u32 %s1891_s24, 7 }
  0x2a   : > { %s2017_s14 = scalar_lea.hbm %s2420_s0, %s1382_s12  ;;  %s228_s29 = scalar_lea.vmem [#allocation2], %s1381_s11 }
  0x2b   : > { %s235_s8 = sshll.u32 %s228_s29, 4  ;;  %p2021_p7 = pnand %p1716_p5, %p38_p9  ;;  %s2019_s8 = int_to_ptr.vmem [resolvable:$true] %s235_s8 }
  0x2c   : > { %s242_s15 = sand.u32 1, %s1891_s24   ;;  %s1383_s16 = sshll.u32 %s2010_s10, 4 }
  0x2d   : > { %s225_s17 = scalar_lea.sflag [#allocation3], %s2010_s10  ;;  %s1789_s18 = scalar_lea.hbm %s2017_s14, 128 }
  0x2e   : > { %p1790_p10 = scmp.ne.s32.totalorder %s2017_s14, %s1789_s18  ;;  %p1791_p11 = pneg %p2021_p7 }
  0x2f   : > { %s1794_s21 = scalar_lea.hbm %s2420_s0, 256  ;;  %p1795_p0 = scmp.lt.u32.totalorder %s2017_s14, %s2420_s0 }
  0x30   : > { %p1792_p12 = pnand %p1791_p11, %p1790_p10  ;;  %p1796_p2 = scmp.lt.u32.totalorder %s1794_s21, %s1789_s18 }
  0x31   : > { %p1798_p6 = scmp.lt.u32.totalorder %s1789_s18, %s2017_s14 }
  0x32   : > { %p1793_p13 = pneg %p1792_p12  ;;  %p1797_p3 = por %p1796_p2, %p1795_p0 }
  0x34   : > { %p1799_p8 = por %p1798_p6, %p1797_p3 }
  0x36   : > { %p1800_p1 = pnand %p1799_p8, %p1793_p13 }
  0x38   : > { %1803 = shalt.err (!%p1800_p1)
}
  0x39   : > { %s1804_s30 = scalar_lea.vmem %s2019_s8, 128  ;;  %s1896_s13 = smov [#allocation2]  }
  0x3a   : > { %p1805_p4 = scmp.ne.s32.totalorder %s2019_s8, %s1804_s30  ;;  %s1809_s29 = sshll.u32 %s1896_s13, 4  ;;  %s1810_s29 = int_to_ptr.vmem [resolvable:$false] %s1809_s29 }
  0x3b   : > { %s1811_s19 = scalar_lea.vmem %s1810_s29, 256  ;;  %p1812_p10 = scmp.lt.s32.totalorder %s2019_s8, %s1810_s29 }
  0x3c   : > { %p1807_p5 = pnand %p1805_p4, %p1791_p11  ;;  %p1813_p12 = scmp.lt.s32.totalorder %s1811_s19, %s1804_s30 }
  0x3e   : > { %p1808_p9 = pneg %p1807_p5  ;;  %p1814_p0 = por %p1813_p12, %p1812_p10 }
  0x40   : > { %p1815_p2 = pnand %p1814_p0, %p1808_p9 }
  0x42   : > { %1818 = shalt.err (!%p1815_p2)
}
  0x43   : > { %1711 = dma.hbm_to_vmem [thread:$0]  (!%p2021_p7), %s2017_s14, 128, %s2019_s8, %s225_s17  }
  0x44   : > { %s1440_s18 = sshll.u32 %s1891_s24, 8  ;;  %s246_s12 = scalar_lea.vmem [#allocation4], %s1383_s16 }
  0x45   : > { %s2057_s11 = scalar_lea.hbm %s2421_s1, %s1440_s18  ;;  %s254_s30 = sshll.u32 %s246_s12, 4  ;;  %s255_s30 = int_to_ptr.vmem [resolvable:$true] %s254_s30 }
  0x46   : > { %s243_s13 = scalar_lea.sflag [#allocation5], %s242_s15  ;;  %s1819_s29 = scalar_lea.hbm %s2057_s11, 256 }
  0x47   : > { %p1820_p13 = scmp.ne.s32.totalorder %s2057_s11, %s1819_s29  ;;  %s1824_s17 = scalar_lea.hbm %s2421_s1, 512 }
  0x48   : > { %p1825_p8 = scmp.lt.u32.totalorder %s2057_s11, %s2421_s1  ;;  %p1826_p1 = scmp.lt.u32.totalorder %s1824_s17, %s1819_s29 }
  0x49   : > { %p1822_p3 = pnand %p1820_p13, %p1791_p11  ;;  %p1828_p5 = scmp.lt.u32.totalorder %s1819_s29, %s2057_s11 }
  0x4a   : > { %p1827_p4 = por %p1826_p1, %p1825_p8 }
  0x4b   : > { %p1823_p6 = pneg %p1822_p3 }
  0x4c   : > { %p1829_p9 = por %p1828_p5, %p1827_p4 }
  0x4e   : > { %p1830_p10 = pnand %p1829_p9, %p1823_p6 }
  0x50   : > { %1833 = shalt.err (!%p1830_p10)
}
  0x51   : > { %s1834_s24 = scalar_lea.vmem %s255_s30, 256  ;;  %s1897_s15 = smov [#allocation4]  }
  0x52   : > { %p1835_p12 = scmp.ne.s32.totalorder %s255_s30, %s1834_s24  ;;  %s1839_s16 = sshll.u32 %s1897_s15, 4  ;;  %s1840_s16 = int_to_ptr.vmem [resolvable:$false] %s1839_s16 }
  0x53   : > { %s1841_s18 = scalar_lea.vmem %s1840_s16, 512  ;;  %p1842_p13 = scmp.lt.s32.totalorder %s255_s30, %s1840_s16 }
  0x54   : > { %p1837_p0 = pnand %p1835_p12, %p1791_p11  ;;  %p1843_p3 = scmp.lt.s32.totalorder %s1841_s18, %s1834_s24 }
  0x56   : > { %p1838_p2 = pneg %p1837_p0  ;;  %p1844_p1 = por %p1843_p3, %p1842_p13 }
  0x58   : > { %p1845_p8 = pnand %p1844_p1, %p1838_p2 }
  0x5a   : > { %1848 = shalt.err (!%p1845_p8)
}
  0x5b   : > { %1714 = dma.hbm_to_vmem [thread:$0]  (!%p2021_p7), %s2057_s11, 256, %s255_s30, %s243_s13  }
  0x5c   : > { %p2434_p6 = scmp.ne.s32.totalorder %s2431_s27, 0 }
  0x5d   : > { %s265_s20 = sand.u32 (!%p2434_p6), 1, %s1883_s22   ;;  %p2435_p11 = scmp.ne.s32.totalorder (!%p2434_p6), %s2430_s26, 0 }
  0x5e   : > { %263 = sbr.rel (%p2434_p6) target bundleno = 1942 (0x796), region = 44  ;;  %s1387_s21 = sshll.u32 (!%p2434_p6), %s265_s20, 3 }
  0x5f   : > { %s266_s12 = scalar_lea.sflag (!%p2434_p6), [#allocation3], %s265_s20  ;;  %s269_s29 = scalar_lea.vmem (!%p2434_p6), [#allocation2], %s1387_s21 }
  0x65   : > { %1866 = dma.done.wait (%p2435_p11), %s266_s12, 128  }
  0x66   : > { %1868 = vsyncadd (%p2435_p11), %s266_s12, 4294967168  ;;  %s274_s14 = sand.u32 1, %s1956_s25   ;;  %s1388_s9 = sshll.u32 %s265_s20, 4 }
  0x67   : > { %s275_s8 = scalar_lea.sflag [#allocation5], %s274_s14  ;;  %s2090_s11 = scalar_lea.vmem [#allocation4], %s1388_s9 }
  0x68   : > { %1870 = dma.done.wait (%p2435_p11), %s275_s8, 256  }
  0x69   : > { %1872 = vsyncadd (%p2435_p11), %s275_s8, 4294967040  ;;  %p2436_p7 = scmp.eq.s32.totalorder %s1956_s25, 0 }
  0x6b   : > { %1874 = dma.done.wait (%p2436_p7), [#allocation5], 256   ;;  %p2437_p4 = pmov %p2436_p7 }
  0x6c   : > { %v1898_v0 = vmov 0.0|0.0   ;;  %vm1899_vm0 = vmmov 0   ;;  %v1900_v1 = vmov 0.0   ;;  %vm332_vm1 = vcmask 1045504   ;;  %v322_v2 = vld [vmem:[#allocation6] sm:$0xff]  ;;  %v407_v5 = vld [vmem:[%s2424_s4] sm:$0xff] }
  0x6d   : > { %1876 = vsyncadd (%p2437_p4), [#allocation5], 4294967040  ;;  %1595 = vmatprep.subr.bf16.mxu0 %v1898_v0  ;;  %1599 = vmatprep.subr.bf16.mxu1 %v1898_v0  ;;  %v323_v3 = vld [vmem:[#allocation6 + $0x8] sm:$0x3f]  ;;  %vm1901_vm2 = vmmov 1   ;;  %v408_v6 = vld [vmem:[%s2424_s4 + $0x8] sm:$0xff]  ;;  %v324_v15 = vlaneseq }
  0x6e   : > { %1493 = vmatprep.mubr.msk.f32.mxu0 %vm1899_vm0, %v1900_v1  ;;  %1504 = vmatprep.mubr.msk.f32.mxu1 %vm1899_vm0, %v1900_v1  ;;  %vm1597_vm3 = vmpackc.low %vm332_vm1, %vm1901_vm2  ;;  %v1596_v4 = vpack.c.bf16 %v323_v3, %v322_v2  ;;  %v1600_v7 = vpack.c.bf16 %v408_v6, %v407_v5  ;;  %v321_v8 = vld [vmem:[%s269_s29] sm:$0xff]  ;;  %vm328_vm4 = vcmask 113664   ;;  %v409_v9 = vld [vmem:[%s2424_s4 + $0x10] sm:$0xff]  ;;  %vm415_vm5 = vcmask 261120   ;;  %p315_p5 = scmp.lt.s32.totalorder %s1956_s25, 1 }
  0x6f   : > { %v410_v10 = vld [vmem:[%s2424_s4 + $0x18] sm:$0xff]  ;;  %v1394_v12 = vld [vmem:[%s2424_s4 + $0x20] sm:$0xff]  ;;  %v1395_v13 = vld [vmem:[%s2424_s4 + $0x28] sm:$0xff]  ;;  %v2132_v16 = vshrl.u32 %v324_v15, 7  ;;  %vm607_vm6 = vcmask 752640   ;;  %vm611_vm7 = vcmask 1043456  }
  0x70   : > { %1598 = vmatpush3.bf16.msk.msra.mxu0 %vm1597_vm3, %v1596_v4  ;;  %1601 = vmatpush3.bf16.msra.mxu1 %v1600_v7  ;;  %v1603_v11 = vpack.c.bf16 %v410_v10, %v409_v9  ;;  %v1606_v14 = vpack.c.bf16 %v1395_v13, %v1394_v12  ;;  %v2138_v18 = vld [vmem:[%s2425_s5] sm:$0xff]  ;;  %v576_v21 = vld [vmem:[%s2423_s3 + $0x8] sm:$0xff]  ;;  %v577_v27 = vld [vmem:[%s2423_s3 + $0x10] sm:$0xff]  ;;  %s2445_s25 = smov (!%p315_p5, %s1956_s25), 1  ;;  %vm1278_vm12 = vcmask 64512  }
  0x71   : > { %1605 = vmatprep.subr.bf16.mxu0 %v1898_v0  ;;  %1602 = vmatprep.subr.bf16.mxu1 %v1898_v0  ;;  %v326_v17 = vsub.s32 0, %v2132_v16  ;;  %v575_v20 = vld [vmem:[%s2423_s3] sm:$0xff]  ;;  %v578_v28 = vld [vmem:[%s2423_s3 + $0x18] sm:$0xff]  ;;  %v580_v32 = vld [vmem:[%s2423_s3 + $0x28] sm:$0xff]  ;;  %v413_v9 = vsub.s32 1, %v2132_v16  ;;  %s1390_s30 = sshll.u32 %s2445_s25, 3 }
  0x72   : > { %v1612_v25 = vpack.c.bf16 %v576_v21, %v575_v20  ;;  %v574_v29 = vld [vmem:[%s2090_s11 + $0x8] sm:$0xff]  ;;  %v1615_v30 = vpack.c.bf16 %v578_v28, %v577_v27  ;;  %v579_v31 = vld [vmem:[%s2423_s3 + $0x20] sm:$0xff]  ;;  %v581_v34 = vld [vmem:[%s2423_s3 + $0x30] sm:$0xff]  ;;  %s318_s10 = scalar_lea.vmem %s2426_s6, %s1390_s30 }
  0x73   : > { %1494 = vmatmul.mubr.msk.f32.vlgmr.msra.gmra.mrb[0].mxu0 %vm328_vm4, %v321_v8  ;;  %v327_v19 = vrot.slane %v2138_v18, %v326_v17  ;;  %v1618_v33 = vpack.c.bf16 %v580_v32, %v579_v31  ;;  %v582_v35 = vld [vmem:[%s2423_s3 + $0x38] sm:$0xff]  ;;  %v583_v37 = vld [vmem:[%s2423_s3 + $0x40] sm:$0xff]  ;;  %v584_v38 = vld [vmem:[%s2423_s3 + $0x48] sm:$0xff]  ;;  %v414_v10 = vrot.slane %v2138_v18, %v413_v9 }
  0x74   : > { %1515 = vmatprep.mubr.msk.f32.mxu0 %vm1899_vm0, %v1900_v1  ;;  %1604 = vmatpush3.bf16.msra.mxu1 %v1603_v11  ;;  %v1621_v36 = vpack.c.bf16 %v582_v35, %v581_v34  ;;  %v1624_v39 = vpack.c.bf16 %v584_v38, %v583_v37  ;;  %v585_v40 = vld [vmem:[%s2423_s3 + $0x50] sm:$0xff]  ;;  %v586_v41 = vld [vmem:[%s2423_s3 + $0x58] sm:$0xff]  ;;  %v587_v43 = vld [vmem:[%s2423_s3 + $0x60] sm:$0xff] }
  0x75   : > { %1611 = vmatprep.subr.bf16.mxu1 %v1898_v0  ;;  %1607 = vmatpush3.bf16.msra.mxu0 %v1606_v14  ;;  %v1627_v42 = vpack.c.bf16 %v586_v41, %v585_v40  ;;  %v588_v44 = vld [vmem:[%s2423_s3 + $0x68] sm:$0xff]  ;;  %v589_v46 = vld [vmem:[%s2423_s3 + $0x70] sm:$0xff]  ;;  %v590_v47 = vld [vmem:[%s2423_s3 + $0x78] sm:$0xff] }
  0x76   : > { %1608 = vmatprep.subr.bf16.mxu0 %v1898_v0  ;;  %v1630_v45 = vpack.c.bf16 %v588_v44, %v587_v43  ;;  %v1633_v48 = vpack.c.bf16 %v590_v47, %v589_v46  ;;  %v591_v49 = vld [vmem:[%s2423_s3 + $0x80] sm:$0xff]  ;;  %v592_v50 = vld [vmem:[%s2423_s3 + $0x88] sm:$0xff]  ;;  %v593_v52 = vld [vmem:[%s2423_s3 + $0x90] sm:$0xff] }
  0x77   : > { %v1636_v51 = vpack.c.bf16 %v592_v50, %v591_v49  ;;  %v594_v53 = vld [vmem:[%s2423_s3 + $0x98] sm:$0xff]  ;;  %v595_v55 = vld [vmem:[%s2423_s3 + $0xa0] sm:$0xff]  ;;  %v596_v56 = vld [vmem:[%s2423_s3 + $0xa8] sm:$0xff] }
  0x78   : > { %v1639_v54 = vpack.c.bf16 %v594_v53, %v593_v52  ;;  %v1642_v57 = vpack.c.bf16 %v596_v56, %v595_v55  ;;  %v597_v58 = vld [vmem:[%s2423_s3 + $0xb0] sm:$0xff]  ;;  %v598_v59 = vld [vmem:[%s2423_s3 + $0xb8] sm:$0xff]  ;;  %v599_v61 = vld [vmem:[%s2423_s3 + $0xc0] sm:$0xff]  ;;  %v497_v53 = vsub.s32 2, %v2132_v16 }
  0x79   : > { %v1645_v60 = vpack.c.bf16 %v598_v59, %v597_v58  ;;  %v600_v62 = vld [vmem:[%s2423_s3 + $0xc8] sm:$0xff]  ;;  %v601_v2 = vld [vmem:[%s2423_s3 + $0xd0] sm:$0xff]  ;;  %v602_v3 = vld [vmem:[%s2423_s3 + $0xd8] sm:$0xf] }
  0x7a   : > { %v1648_v63 = vpack.c.bf16 %v600_v62, %v599_v61  ;;  %v1651_v4 = vpack.c.bf16 %v602_v3, %v601_v2  ;;  %vm1652_vm8 = vmpackc.low %vm611_vm7, %vm1901_vm2  ;;  %v573_v5 = vld [vmem:[%s2090_s11] sm:$0xff]  ;;  %v1397_v7 = vld [vmem:[%s2424_s4 + $0x38] sm:$0xff] }
  0x7b   : > { %v1396_v6 = vld [vmem:[%s2424_s4 + $0x30] sm:$0xff]  ;;  %v1401_v11 = vld [vmem:[%s2424_s4 + $0x40] sm:$0xff]  ;;  %v1402_v12 = vld [vmem:[%s2424_s4 + $0x48] sm:$0xff] }
  0x7c   : > { %v1609_v8 = vpack.c.bf16 %v1397_v7, %v1396_v6  ;;  %v1655_v20 = vpack.c.bf16 %v1402_v12, %v1401_v11  ;;  %v1406_v31 = vld [vmem:[%s2424_s4 + $0x60] sm:$0xff]  ;;  %v1407_v32 = vld [vmem:[%s2424_s4 + $0x68] sm:$0xff]  ;;  %v1408_v34 = vld [vmem:[%s2424_s4 + $0x70] sm:$0xff] }
  0x7d   : > { %v1409_v35 = vld [vmem:[%s2424_s4 + $0x78] sm:$0xff]  ;;  %v1415_v41 = vld [vmem:[%s2424_s4 + $0xa0] sm:$0xff]  ;;  %v1412_v55 = vld [vmem:[%s2424_s4 + $0x88] sm:$0xff] }
  0x7e   : > { %1610 = vmatpush3.bf16.msra.mxu0 %v1609_v8  ;;  %v1418_v49 = vld [vmem:[%s2424_s4 + $0xb8] sm:$0xff]  ;;  %v1413_v62 = vld [vmem:[%s2424_s4 + $0x90] sm:$0xff]  ;;  %v1422_v6 = vld [vmem:[%s2424_s4 + $0xc8] sm:$0xff] }
  0x7f   : > { %1654 = vmatprep.subr.bf16.mxu0 %v1898_v0  ;;  %v1423_v8 = vld [vmem:[%s2424_s4 + $0xd0] sm:$0xff] }
 0x146   : > { %v402_v22 = vpop.f32.mrb[0].mxu0 }
 0x147   : > { %v403_v23 = vadd.f32 %v402_v22, %v327_v19  ;;  %v1495_v24 = vpop.f32.mrb[1].mxu0  ;;  %v1403_v22 = vld [vmem:[%s2424_s4 + $0x50] sm:$0xff] }
 0x149   : > { %v406_v26 = vmax.f32 %v403_v23, 0.0  ;;  %v1404_v23 = vld [vmem:[%s2424_s4 + $0x58] sm:$0xff] }
 0x14a   : > { %v1658_v24 = vpack.c.bf16 %v1404_v23, %v1403_v22  ;;  %v1426_v23 = vld [vmem:[%s2424_s4 + $0xe0] sm:$0xff] }
 0x14b   : > { %1505 = vmatmul.mubr.msk.f32.vlgmr.msra.gmra.mrb[0].mxu1 %vm415_vm5, %v406_v26 }
 0x14c   : > { %1613 = vmatpush1.bf16.msra.mxu1 %v1612_v25  ;;  %1400 = vmatprep.mubr.msk.f32.mxu1 %vm607_vm6, %v574_v29  ;;  %v605_v25 = vsub.s32 3, %v2132_v16 }
 0x14d   : > { %1614 = vmatprep.subr.bf16.mxu1 %v1898_v0 }
 0x14e   : > { %v606_v26 = vrot.slane %v2138_v18, %v605_v25 }
 0x150   : > { %1616 = vmatpush1.bf16.msra.mxu1 %v1615_v30 }
 0x151   : > { %1617 = vmatprep.subr.bf16.mxu1 %v1898_v0 }
 0x154   : > { %1619 = vmatpush1.bf16.msra.mxu1 %v1618_v33  ;;  %v1661_v33 = vpack.c.bf16 %v1407_v32, %v1406_v31  ;;  %v1021_v31 = vsub.s32 7, %v2132_v16 }
 0x155   : > { %1620 = vmatprep.subr.bf16.mxu1 %v1898_v0 }
 0x156   : > { %v1022_v32 = vrot.slane %v2138_v18, %v1021_v31 }
 0x158   : > { %1622 = vmatpush1.bf16.msra.mxu1 %v1621_v36  ;;  %v1664_v36 = vpack.c.bf16 %v1409_v35, %v1408_v34  ;;  %v1432_v34 = vld [vmem:[%s2424_s4 + $0x108] sm:$0xff] }
 0x159   : > { %1623 = vmatprep.subr.bf16.mxu1 %v1898_v0 }
 0x15c   : > { %1625 = vmatpush1.bf16.msra.mxu1 %v1624_v39  ;;  %v693_v39 = vsub.s32 4, %v2132_v16 }
 0x15d   : > { %1626 = vmatprep.subr.bf16.mxu1 %v1898_v0 }
 0x15e   : > { %v694_v40 = vrot.slane %v2138_v18, %v693_v39 }
 0x160   : > { %1628 = vmatpush1.bf16.msra.mxu1 %v1627_v42  ;;  %v1416_v42 = vld [vmem:[%s2424_s4 + $0xa8] sm:$0xff] }
 0x161   : > { %1629 = vmatprep.subr.bf16.mxu1 %v1898_v0  ;;  %v1667_v46 = vpack.c.bf16 %v1416_v42, %v1415_v41  ;;  %v320_v42 = vld [vmem:[%s2425_s5 + $0x8] sm:$0xff] }
 0x164   : > { %1631 = vmatpush1.bf16.msra.mxu1 %v1630_v45 }
 0x165   : > { %1632 = vmatprep.subr.bf16.mxu1 %v1898_v0 }
 0x168   : > { %1634 = vmatpush1.bf16.msra.mxu1 %v1633_v48  ;;  %v1417_v48 = vld [vmem:[%s2424_s4 + $0xb0] sm:$0xff] }
 0x169   : > { %1635 = vmatprep.subr.bf16.mxu1 %v1898_v0  ;;  %v1670_v50 = vpack.c.bf16 %v1418_v49, %v1417_v48 }
 0x16c   : > { %1637 = vmatpush1.bf16.msra.mxu1 %v1636_v51  ;;  %v776_v51 = vsub.s32 5, %v2132_v16 }
 0x16d   : > { %1638 = vmatprep.subr.bf16.mxu1 %v1898_v0 }
 0x16e   : > { %v777_v52 = vrot.slane %v2138_v18, %v776_v51 }
 0x170   : > { %1640 = vmatpush1.bf16.msra.mxu1 %v1639_v54  ;;  %v1411_v54 = vld [vmem:[%s2424_s4 + $0x80] sm:$0xff] }
 0x171   : > { %1641 = vmatprep.subr.bf16.mxu1 %v1898_v0  ;;  %v1673_v59 = vpack.c.bf16 %v1412_v55, %v1411_v54 }
 0x174   : > { %1643 = vmatpush1.bf16.msra.mxu1 %v1642_v57 }
 0x175   : > { %1644 = vmatprep.subr.bf16.mxu1 %v1898_v0 }
 0x178   : > { %1646 = vmatpush1.bf16.msra.mxu1 %v1645_v60  ;;  %v498_v60 = vrot.slane %v2138_v18, %v497_v53 }
 0x179   : > { %1647 = vmatprep.subr.bf16.mxu1 %v1898_v0 }
 0x17c   : > { %1649 = vmatpush1.bf16.msra.mxu1 %v1648_v63  ;;  %v1414_v63 = vld [vmem:[%s2424_s4 + $0x98] sm:$0xff] }
 0x17d   : > { %1650 = vmatprep.subr.bf16.mxu1 %v1898_v0  ;;  %v1676_v2 = vpack.c.bf16 %v1414_v63, %v1413_v62 }
 0x180   : > { %1653 = vmatpush1.bf16.msk.msra.mxu1 %vm1652_vm8, %v1651_v4 }
 0x183   : > { %680 = vmatmul.mubr.f32.vlgmr.msra.gmra.mrb[2].mxu1 %v573_v5  ;;  %v1421_v5 = vld [vmem:[%s2424_s4 + $0xc0] sm:$0xff] }
 0x184   : > { %v1679_v7 = vpack.c.bf16 %v1422_v6, %v1421_v5 }
 0x21e   : > { %v485_v13 = vpop.f32.mrb[0].mxu1 }
 0x21f   : > { %v486_v14 = vadd.f32 %v485_v13, %v414_v10  ;;  %v1506_v19 = vpop.f32.mrb[1].mxu1  ;;  %v1424_v10 = vld [vmem:[%s2424_s4 + $0xd8] sm:$0xff] }
 0x220   : > { %v1682_v11 = vpack.c.bf16 %v1424_v10, %v1423_v8 }
 0x221   : > { %v489_v21 = vmax.f32 %v486_v14, 0.0  ;;  %v1010_v14 = vsub.s32 6, %v2132_v16 }
 0x223   : > { %1516 = vmatmul.mubr.msk.f32.vlgmr.msra.gmra.mrb[2].mxu0 %vm415_vm5, %v489_v21  ;;  %v1011_v19 = vrot.slane %v2138_v18, %v1010_v14  ;;  %v1433_v18 = vld [vmem:[%s2424_s4 + $0x110] sm:$0xff] }
 0x224   : > { %1656 = vmatpush3.bf16.msra.mxu0 %v1655_v20  ;;  %1526 = vmatprep.mubr.msk.f32.mxu0 %vm1899_vm0, %v1900_v1 }
 0x225   : > { %1657 = vmatprep.subr.bf16.mxu0 %v1898_v0 }
 0x228   : > { %1659 = vmatpush3.bf16.msra.mxu0 %v1658_v24  ;;  %v1427_v24 = vld [vmem:[%s2424_s4 + $0xe8] sm:$0xff] }
 0x229   : > { %1660 = vmatprep.subr.bf16.mxu0 %v1898_v0 }
 0x256   : > { %v681_v27 = vpop.f32.mrb[2].mxu1 }
 0x257   : > { %v682_v28 = vadd.f32 %v681_v27, %v606_v26  ;;  %v683_v29 = vpop.f32.mrb[3].mxu1  ;;  %v1685_v26 = vpack.c.bf16 %v1427_v24, %v1426_v23 }
 0x258   : > { %v1429_v29 = vld [vmem:[%s2424_s4 + $0xf8] sm:$0xff] }
 0x259   : > { %v685_v30 = vmax.f32 %v682_v28, 0.0  ;;  %v1428_v28 = vld [vmem:[%s2424_s4 + $0xf0] sm:$0xff] }
 0x25b   : > { %1527 = vmatmul.mubr.msk.f32.vlgmr.msra.gmra.mrb[4].mxu0 %vm415_vm5, %v685_v30  ;;  %v1688_v30 = vpack.c.bf16 %v1429_v29, %v1428_v28 }
 0x25c   : > { %1537 = vmatprep.mubr.msk.f32.mxu0 %vm1899_vm0, %v1900_v1  ;;  %1662 = vmatpush3.bf16.msra.mxu0 %v1661_v33  ;;  %v1431_v33 = vld [vmem:[%s2424_s4 + $0x100] sm:$0xff] }
 0x25d   : > { %1663 = vmatprep.subr.bf16.mxu0 %v1898_v0 }
 0x260   : > { %1665 = vmatpush3.bf16.msra.mxu0 %v1664_v36 }
 0x261   : > { %1666 = vmatprep.subr.bf16.mxu0 %v1898_v0 }
 0x2f6   : > { %v568_v37 = vpop.f32.mrb[2].mxu0 }
 0x2f7   : > { %v1517_v38 = vpop.f32.mrb[3].mxu0  ;;  %v569_v3 = vadd.f32 %v568_v37, %v498_v60 }
 0x2f8   : > { %v1691_v38 = vpack.c.bf16 %v1432_v34, %v1431_v33 }
 0x2f9   : > { %v572_v4 = vmax.f32 %v569_v3, 0.0 }
 0x32e   : > { %v764_v43 = vpop.f32.mrb[4].mxu0 }
 0x32f   : > { %v765_v44 = vadd.f32 %v764_v43, %v694_v40  ;;  %v1528_v45 = vpop.f32.mrb[5].mxu0  ;;  %v1434_v40 = vld [vmem:[%s2424_s4 + $0x118] sm:$0xff]  ;;  %v1105_v43 = vrot.slane %v320_v42, %v326_v17 }
 0x330   : > { %v1694_v41 = vpack.c.bf16 %v1434_v40, %v1433_v18 }
 0x331   : > { %v768_v47 = vmax.f32 %v765_v44, 0.0 }
 0x333   : > { %1538 = vmatmul.mubr.msk.f32.vlgmr.msra.gmra.mrb[6].mxu0 %vm415_vm5, %v768_v47  ;;  %v1188_v47 = vrot.slane %v320_v42, %v413_v9 }
 0x334   : > { %1668 = vmatpush3.bf16.msra.mxu0 %v1667_v46  ;;  %1548 = vmatprep.mubr.msk.f32.mxu0 %vm1899_vm0, %v1900_v1  ;;  %v1263_v46 = vand.u32 127, %v324_v15 }
 0x335   : > { %1669 = vmatprep.subr.bf16.mxu0 %v1898_v0 }
 0x336   : > { %vm1264_vm9 = vcmp.ge.s32.totalorder %v1263_v46, 4  ;;  %vm1265_vm10 = vcmp.lt.s32.totalorder %v1263_v46, 7 }
 0x337   : > { %vm2394_vm11 = vmand %vm1264_vm9, %vm1265_vm10 }
 0x338   : > { %1671 = vmatpush3.bf16.msra.mxu0 %v1670_v50 }
 0x339   : > { %1672 = vmatprep.subr.bf16.mxu0 %v1898_v0 }
 0x406   : > { %v847_v56 = vpop.f32.mrb[6].mxu0 }
 0x407   : > { %v848_v57 = vadd.f32 %v847_v56, %v777_v52  ;;  %v1539_v58 = vpop.f32.mrb[7].mxu0 }
 0x409   : > { %v851_v61 = vmax.f32 %v848_v57, 0.0 }
 0x40b   : > { %1549 = vmatmul.mubr.msk.f32.vlgmr.msra.gmra.mrb[8].mxu0 %vm415_vm5, %v851_v61 }
 0x40c   : > { %1674 = vmatpush3.bf16.msra.mxu0 %v1673_v59  ;;  %1559 = vmatprep.mubr.msk.f32.mxu0 %vm1899_vm0, %v1900_v1 }
 0x40d   : > { %1675 = vmatprep.subr.bf16.mxu0 %v1898_v0 }
 0x410   : > { %1677 = vmatpush3.bf16.msra.mxu0 %v1676_v2 }
 0x411   : > { %1678 = vmatprep.subr.bf16.mxu0 %v1898_v0 }
 0x413   : > { %1560 = vmatmul.mubr.msk.f32.vlgmr.msra.gmra.mrb[10].mxu0 %vm415_vm5, %v572_v4 }
 0x414   : > { %1570 = vmatprep.mubr.msk.f32.mxu0 %vm1899_vm0, %v1900_v1  ;;  %1680 = vmatpush3.bf16.msra.mxu0 %v1679_v7 }
 0x415   : > { %1681 = vmatprep.subr.bf16.mxu0 %v1898_v0 }
 0x418   : > { %1683 = vmatpush3.bf16.msra.mxu0 %v1682_v11 }
 0x419   : > { %1684 = vmatprep.subr.bf16.mxu0 %v1898_v0 }
 0x4de   : > { %v931_v12 = vpop.f32.mrb[8].mxu0 }
 0x4df   : > { %v1550_v13 = vpop.f32.mrb[9].mxu0 }
 0x4e6   : > { %v1004_v20 = vpop.f32.mrb[10].mxu0 }
 0x4e7   : > { %v1005_v21 = vadd.f32 %v1004_v20, %v931_v12  ;;  %v1561_v22 = vpop.f32.mrb[11].mxu0 }
 0x4e9   : > { %v1012_v25 = vadd.f32 %v1011_v19, %v1005_v21 }
 0x4eb   : > { %v1013_v27 = vmax.f32 %v1012_v25, 0.0 }
 0x4ed   : > { %1571 = vmatmul.mubr.msk.f32.vlgmr.msra.gmra.mrb[12].mxu0 %vm415_vm5, %v1013_v27 }
 0x4ee   : > { %1686 = vmatpush3.bf16.msra.mxu0 %v1685_v26  ;;  %1581 = vmatprep.mubr.msk.f32.mxu0 %vm1899_vm0, %v1900_v1 }
 0x4ef   : > { %1687 = vmatprep.subr.bf16.mxu0 %v1898_v0 }
 0x4f2   : > { %1689 = vmatpush3.bf16.msra.mxu0 %v1688_v30 }
 0x4f3   : > { %1690 = vmatprep.subr.bf16.mxu0 %v1898_v0 }
 0x5c0   : > { %v1092_v35 = vpop.f32.mrb[12].mxu0 }
 0x5c1   : > { %v1093_v36 = vadd.f32 %v1092_v35, %v1022_v32  ;;  %v1572_v37 = vpop.f32.mrb[13].mxu0 }
 0x5c3   : > { %v1096_v39 = vmax.f32 %v1093_v36, 0.0 }
 0x5c5   : > { %1582 = vmatmul.mubr.msk.f32.vlgmr.msra.gmra.mrb[14].mxu0 %vm415_vm5, %v1096_v39 }
 0x5c6   : > { %1692 = vmatpush3.bf16.msra.mxu0 %v1691_v38  ;;  %1592 = vmatprep.mubr.msk.f32.mxu0 %vm1899_vm0, %v1900_v1 }
 0x5c7   : > { %1693 = vmatprep.subr.bf16.mxu0 %v1898_v0 }
 0x5ca   : > { %1695 = vmatpush3.bf16.msra.mxu0 %v1694_v41 }
 0x698   : > { %v1175_v1 = vpop.f32.mrb[14].mxu0 }
 0x699   : > { %v1176_v44 = vadd.f32 %v1175_v1, %v1105_v43  ;;  %v1583_v0 = vpop.f32.mrb[15].mxu0 }
 0x69b   : > { %v1179_v45 = vmax.f32 %v1176_v44, 0.0 }
 0x69d   : > { %1593 = vmatmul.mubr.msk.f32.vlgmr.msra.gmra.mrb[16].mxu0 %vm415_vm5, %v1179_v45 }
 0x770   : > { %v1258_v48 = vpop.f32.mrb[16].mxu0 }
 0x771   : > { %v1259_v49 = vadd.f32 %v1258_v48, %v1188_v47  ;;  %v1594_v50 = vpop.f32.mrb[17].mxu0 }
 0x773   : > { %v1267_v51 = vmul.f32 2.0, %v1259_v49 }
 0x775   : > { %v1268_v52 = vsel %vm2394_vm11, %v1267_v51, %v1259_v49 }
 0x776   : > { %v1436_v53 = vmul.f32 -1.442695, %v1268_v52 }
 0x778   : > { %1757 = vpow2.f32 %v1436_v53 }
 0x782   : > { %v1758_v15 = vpop.eup %1757 }
 0x783   : > { %v1272_v54 = vadd.f32 1.0, %v1758_v15 }
 0x785   : > { %1759 = vrcp.f32 %v1272_v54 }
 0x78f   : > { %v1760_v16 = vpop.eup %1759 }
 0x790   : > { %v1275_v9 = vmul.f32 2.0, %v1760_v16 }
 0x792   : > { %v1437_v55 = vadd.f32 -1.0, %v1275_v9 }
 0x794   : > { %v1277_v56 = vsel %vm2394_vm11, %v1437_v55, %v1760_v16 }
 0x795   : > { %1279 = vst.msk [vmem:[%s318_s10] sm:$0xff] %vm1278_vm12, %v1277_v56 }
 0x796 PF: > { %p19_p9 = scmp.ge.s32.totalorder %s1981_s7, 4   ;;  %s2440_s21 = smov %s1883_s22 }
 0x797   : > { %s2441_s22 = smov %s1887_s23  ;;  %s2442_s23 = smov %s2007_s28 }
 0x798   : > { %s2443_s24 = smov %s1981_s7  ;;  %21 = sbr.rel (!%p19_p9) target bundleno = 5 (0x5), region = 109 }
 0x79f   :  { %1299 = vsyncpa [#allocation3], 1 }
 0x7a0   :  { %1301 = vsyncpa [#allocation3 + $0x1], 1 }
 0x7a1   :  { %1302 = vsyncpa [#allocation5], 1 }
 0x7a2   :  { %1304 = vsyncpa [#allocation5 + $0x1], 1 }

</bundles_post_ra>
